<compile_context>
chip_gen: v5e
topology: v5e:2x2
jax: 0.10.0
libtpu: 0.0.40
codegen_flags: <defaults>
</compile_context>

<pallas_src>
import math

import jax
import jax.numpy as jnp
from jax.experimental import pallas as pl
from jax.experimental.pallas import tpu as pltpu


def _round_up(x: int, m: int) -> int:
    return (x + m - 1) // m * m


# --------------------------------------------------------------------------- #
# Fast path: embedding table resident in VMEM, rows gathered with dynamic-
# slice vector loads (no per-row DMA descriptors).
# --------------------------------------------------------------------------- #
def _embed_vmem_kernel(ids_ref, table_ref, out_ref):
    # ids_ref:   (N_PAD,)        int32 SMEM  (scalar-prefetched token ids)
    # table_ref: (VOCAB, EMB_P)  VMEM        (constant index_map -> loaded once)
    # out_ref:   (TILE, EMB_P)   VMEM        (current output block)
    tile = out_ref.shape[0]
    base = pl.program_id(0) * tile
    groups = tile // 8  # tile is always a multiple of 8

    def gather_group(g, carry):
        rb = pl.multiple_of(g * 8, 8)  # aligned sublane offset for the store
        rows = [
            table_ref[pl.ds(ids_ref[base + rb + j], 1), :]  # dynamic-row load
            for j in range(8)                               # python-unrolled
        ]
        # One full (8, EMB_P) lane/sublane-dense store per group instead of
        # eight masked single-row stores.
        out_ref[pl.ds(rb, 8), :] = jnp.concatenate(rows, axis=0)
        return carry

    jax.lax.fori_loop(0, groups, gather_group, 0)


# --------------------------------------------------------------------------- #
# Large-table path: table stays in HBM; one row-gather DMA per token, all
# queued on one semaphore, then ONE aggregate wait per tile.
# --------------------------------------------------------------------------- #
def _embed_hbm_kernel(ids_ref, table_ref, out_ref, sem):
    tile = out_ref.shape[0]
    base = pl.program_id(0) * tile

    def issue_row(r, carry):
        tok = ids_ref[base + r]
        pltpu.make_async_copy(
            table_ref.at[pl.ds(tok, 1), :],
            out_ref.at[pl.ds(r, 1), :],
            sem,
        ).start()
        return carry

    # Unrolled issue loop: row r+1's scalar address math overlaps row r's
    # descriptor push.
    jax.lax.fori_loop(0, tile, issue_row, 0, unroll=8)

    # Single aggregate wait: DMA semaphores count bytes, and this descriptor
    # covers exactly tile * EMB_P * itemsize bytes -- the sum of the `tile`
    # row copies issued above.  (Wrapper guarantees vocab >= tile.)
    pltpu.make_async_copy(
        table_ref.at[pl.ds(0, tile), :],
        out_ref,
        sem,
    ).wait()


def embedder_forward(token_ids, table, *, tile=None, force_hbm_gather=False):
    """Equivalent of Embedder.forward: table[token_ids]."""
    orig_shape = token_ids.shape
    n = int(math.prod(orig_shape)) if orig_shape else 1
    vocab, emb = table.shape
    itemsize = jnp.dtype(table.dtype).itemsize

    # Lane-dense output: pad the embedding dim to a multiple of 128 only when
    # needed (no-op for the common emb % 128 == 0 case).
    # TODO(synk): for real models pad the table once at module init, not per call.
    emb_p = _round_up(emb, 128)
    pad_emb = emb_p != emb
    if pad_emb:
        table = jnp.pad(table, ((0, 0), (0, emb_p - emb)))

    # Dtype-aware minimum sublane tile (8 f32 / 16 bf16 / 32 int8) so the
    # output block never hits packed/masked layouts.
    min_tile = max(8, 32 // itemsize)

    if tile is None:
        tile = 256 if emb_p <= 512 else 128
    tile = max(min_tile, min(_round_up(tile, min_tile), _round_up(n, min_tile)))

    # Conservative per-generation VMEM budget (v7x has only 64 MiB per TC).
    try:
        vmem_cap = int(getattr(pltpu.get_tpu_info(), "vmem_capacity_bytes", 0)) or (64 << 20)
    except Exception:
        vmem_cap = 64 << 20

    # Keep the double-buffered output block small relative to VMEM.
    while tile > min_tile and 2 * tile * emb_p * itemsize > vmem_cap // 4:
        tile = max(min_tile, _round_up(tile // 2, min_tile))

    table_bytes = vocab * emb_p * itemsize
    out_block_bytes = tile * emb_p * itemsize

    # VMEM-resident-table fast path whenever (2x-buffered) table + output
    # blocks + margin fit; otherwise row-gather straight from HBM.
    vmem_need = 2 * table_bytes + 2 * out_block_bytes + (2 << 20)
    use_vmem_table = (not force_hbm_gather) and vmem_need <= int(0.7 * vmem_cap)

    if not use_vmem_table:
        # The aggregate-wait descriptor sources `tile` table rows: need vocab >= tile.
        if vocab < tile:
            tile = max(min_tile, (vocab // min_tile) * min_tile)
        if vocab < tile:
            use_vmem_table = True  # pathological tiny-vocab / huge-row case

    # Flatten and clamp ids.  nn.Embedding raises on out-of-range indices; we
    # clamp instead so the gather can never read out of bounds.
    # TODO(synk): no clean in-kernel equivalent of nn.Embedding's OOB error.
    ids = jnp.clip(token_ids.reshape(-1).astype(jnp.int32), 0, vocab - 1)
    n_pad = _round_up(n, tile)
    if n_pad != n:
        ids = jnp.pad(ids, (0, n_pad - n))  # padded tokens gather row 0, sliced off

    if use_vmem_table:
        kernel = _embed_vmem_kernel
        in_specs = [pl.BlockSpec((vocab, emb_p), lambda i, ids_ref: (0, 0))]
        scratch_shapes = []
        vmem_used = vmem_need
    else:
        kernel = _embed_hbm_kernel
        in_specs = [pl.BlockSpec(memory_space=pl.ANY)]   # table stays in HBM
        scratch_shapes = [pltpu.SemaphoreType.DMA(())]   # one shared DMA semaphore
        vmem_used = 2 * out_block_bytes + (2 << 20)

    compiler_kwargs = dict(dimension_semantics=("parallel",))  # megacore-shardable
    if vmem_used > (16 << 20):  # above the most conservative (v5e) scoped default
        compiler_kwargs["vmem_limit_bytes"] = int(min(0.9 * vmem_cap, vmem_used + (4 << 20)))

    out = pl.pallas_call(
        kernel,
        out_shape=jax.ShapeDtypeStruct((n_pad, emb_p), table.dtype),
        grid_spec=pltpu.PrefetchScalarGridSpec(
            num_scalar_prefetch=1,                       # token ids -> SMEM
            grid=(n_pad // tile,),
            in_specs=in_specs,
            out_specs=pl.BlockSpec((tile, emb_p), lambda i, ids_ref: (i, 0)),
            scratch_shapes=scratch_shapes,
        ),
        compiler_params=pltpu.CompilerParams(**compiler_kwargs),
    )(ids, table)

    if n_pad != n or pad_emb:
        out = out[:n, :emb]
    return out.reshape(*orig_shape, emb)


if __name__ == "__main__":
    # Small, deterministic setup consistent with Embedder(vocab_size, emb_dim).
    vocab_size = 64
    emb_dim = 128
    batch, seq = 2, 8

    key = jax.random.PRNGKey(0)
    k_table, k_ids = jax.random.split(key)

    # Deterministic "weights" for nn.Embedding(vocab_size, emb_dim).
    table = jax.random.normal(k_table, (vocab_size, emb_dim), dtype=jnp.float32)
    # Integer token ids, shape (B, S) like the PyTorch module's input.
    token_ids = jax.random.randint(k_ids, (batch, seq), 0, vocab_size, dtype=jnp.int32)

    ref = jnp.take(table, token_ids, axis=0)

    # Default path for this size: VMEM-resident table, dynamic-slice gather.
    out = jax.block_until_ready(embedder_forward(token_ids, table))
    assert out.shape == (batch, seq, emb_dim)
    assert out.dtype == jnp.float32
    assert jnp.allclose(out, ref), "VMEM-resident path mismatch vs reference gather"

    # Large-table path: HBM row-gather DMA with a single aggregate wait.
    out_hbm = jax.block_until_ready(
        embedder_forward(token_ids, table, force_hbm_gather=True))
    assert jnp.allclose(out_hbm, ref), "HBM row-gather path mismatch vs reference gather"

    print("KERNEL_OK")
</pallas_src>

<mosaic_0001>
module attributes {stable_mosaic.version = 11 : i64} {
  func.func @_embed_vmem_kernel(%arg0: i32, %arg1: memref<16xi32, #tpu.memory_space<smem>>, %arg2: memref<64x128xf32, #tpu.memory_space<vmem>>, %arg3: memref<16x128xf32, #tpu.memory_space<vmem>>) attributes {dimension_semantics = [#tpu.dimension_semantics<parallel>], iteration_bounds = array<i64: 1>, scalar_prefetch = 1 : i64, scratch_operands = 0 : i64, tpu.core_type = #tpu.core_type<tc>, window_params = [{pipeline_mode = #tpu.pipeline_mode<synchronous>, transform_indices = @transform_0, window_bounds = array<i64: 64, 128>}, {transform_indices = @transform_1, window_bounds = array<i64: 16, 128>}]} {
    %c16_i32 = arith.constant 16 : i32
    %0 = arith.muli %arg0, %c16_i32 : i32
    %c0_i32 = arith.constant 0 : i32
    %c2_i32 = arith.constant 2 : i32
    %1 = arith.addi %c0_i32, %c2_i32 : i32
    %c1_i32 = arith.constant 1 : i32
    scf.for %arg4 = %c0_i32 to %1 step %c1_i32  : i32 {
      %c8_i32 = arith.constant 8 : i32
      %2 = arith.muli %arg4, %c8_i32 : i32
      %3 = tpu.assume_multiple %2, 8 : i32
      %4 = arith.addi %0, %3 : i32
      %c0_i32_1 = arith.constant 0 : i32
      %5 = arith.addi %4, %c0_i32_1 : i32
      %6 = arith.index_cast %5 : i32 to index
      %7 = memref.load %arg1[%6] : memref<16xi32, #tpu.memory_space<smem>>
      %8 = arith.index_cast %7 : i32 to index
      %c0 = arith.constant 0 : index
      %9 = vector.load %arg2[%8, %c0] : memref<64x128xf32, #tpu.memory_space<vmem>>, vector<1x128xf32>
      %10 = arith.addi %0, %3 : i32
      %c1_i32_2 = arith.constant 1 : i32
      %11 = arith.addi %10, %c1_i32_2 : i32
      %12 = arith.index_cast %11 : i32 to index
      %13 = memref.load %arg1[%12] : memref<16xi32, #tpu.memory_space<smem>>
      %14 = arith.index_cast %13 : i32 to index
      %c0_3 = arith.constant 0 : index
      %15 = vector.load %arg2[%14, %c0_3] : memref<64x128xf32, #tpu.memory_space<vmem>>, vector<1x128xf32>
      %16 = arith.addi %0, %3 : i32
      %c2_i32_4 = arith.constant 2 : i32
      %17 = arith.addi %16, %c2_i32_4 : i32
      %18 = arith.index_cast %17 : i32 to index
      %19 = memref.load %arg1[%18] : memref<16xi32, #tpu.memory_space<smem>>
      %20 = arith.index_cast %19 : i32 to index
      %c0_5 = arith.constant 0 : index
      %21 = vector.load %arg2[%20, %c0_5] : memref<64x128xf32, #tpu.memory_space<vmem>>, vector<1x128xf32>
      %22 = arith.addi %0, %3 : i32
      %c3_i32 = arith.constant 3 : i32
      %23 = arith.addi %22, %c3_i32 : i32
      %24 = arith.index_cast %23 : i32 to index
      %25 = memref.load %arg1[%24] : memref<16xi32, #tpu.memory_space<smem>>
      %26 = arith.index_cast %25 : i32 to index
      %c0_6 = arith.constant 0 : index
      %27 = vector.load %arg2[%26, %c0_6] : memref<64x128xf32, #tpu.memory_space<vmem>>, vector<1x128xf32>
      %28 = arith.addi %0, %3 : i32
      %c4_i32 = arith.constant 4 : i32
      %29 = arith.addi %28, %c4_i32 : i32
      %30 = arith.index_cast %29 : i32 to index
      %31 = memref.load %arg1[%30] : memref<16xi32, #tpu.memory_space<smem>>
      %32 = arith.index_cast %31 : i32 to index
      %c0_7 = arith.constant 0 : index
      %33 = vector.load %arg2[%32, %c0_7] : memref<64x128xf32, #tpu.memory_space<vmem>>, vector<1x128xf32>
      %34 = arith.addi %0, %3 : i32
      %c5_i32 = arith.constant 5 : i32
      %35 = arith.addi %34, %c5_i32 : i32
      %36 = arith.index_cast %35 : i32 to index
      %37 = memref.load %arg1[%36] : memref<16xi32, #tpu.memory_space<smem>>
      %38 = arith.index_cast %37 : i32 to index
      %c0_8 = arith.constant 0 : index
      %39 = vector.load %arg2[%38, %c0_8] : memref<64x128xf32, #tpu.memory_space<vmem>>, vector<1x128xf32>
      %40 = arith.addi %0, %3 : i32
      %c6_i32 = arith.constant 6 : i32
      %41 = arith.addi %40, %c6_i32 : i32
      %42 = arith.index_cast %41 : i32 to index
      %43 = memref.load %arg1[%42] : memref<16xi32, #tpu.memory_space<smem>>
      %44 = arith.index_cast %43 : i32 to index
      %c0_9 = arith.constant 0 : index
      %45 = vector.load %arg2[%44, %c0_9] : memref<64x128xf32, #tpu.memory_space<vmem>>, vector<1x128xf32>
      %46 = arith.addi %0, %3 : i32
      %c7_i32 = arith.constant 7 : i32
      %47 = arith.addi %46, %c7_i32 : i32
      %48 = arith.index_cast %47 : i32 to index
      %49 = memref.load %arg1[%48] : memref<16xi32, #tpu.memory_space<smem>>
      %50 = arith.index_cast %49 : i32 to index
      %c0_10 = arith.constant 0 : index
      %51 = vector.load %arg2[%50, %c0_10] : memref<64x128xf32, #tpu.memory_space<vmem>>, vector<1x128xf32>
      %52 = tpu.concatenate %9, %15, %21, %27, %33, %39, %45, %51 in 0 : vector<1x128xf32>, vector<1x128xf32>, vector<1x128xf32>, vector<1x128xf32>, vector<1x128xf32>, vector<1x128xf32>, vector<1x128xf32>, vector<1x128xf32> -> vector<8x128xf32>
      %53 = arith.index_cast %3 : i32 to index
      %c0_11 = arith.constant 0 : index
      %54 = vector.load %arg3[%53, %c0_11] : memref<16x128xf32, #tpu.memory_space<vmem>>, vector<8x128xf32>
      tpu.vector_store %arg3[%53, %c0_11], %52 {strides = array<i32>} : memref<16x128xf32, #tpu.memory_space<vmem>>, vector<8x128xf32>,
    }
    %c2_i32_0 = arith.constant 2 : i32
    return
  }
  func.func @transform_0(%arg0: i32, %arg1: memref<16xi32, #tpu.memory_space<smem>>) -> (i32, i32) {
    %c0_i32 = arith.constant 0 : i32
    %c0_i32_0 = arith.constant 0 : i32
    %c0_i32_1 = arith.constant 0 : i32
    return %c0_i32, %c0_i32_0 : i32, i32
  }
  func.func @transform_1(%arg0: i32, %arg1: memref<16xi32, #tpu.memory_space<smem>>) -> (i32, i32) {
    %c0_i32 = arith.constant 0 : i32
    %c0_i32_0 = arith.constant 0 : i32
    return %arg0, %c0_i32 : i32, i32
  }
}

</mosaic_0001>

<bundles_post_ra>
// kernel: tpu_custom_call.1
= control target key start
LH: loop header
LB: loop body
LE: loop exit
PB: predicated region body
PF: predicated region fallthrough
CT: control target
= control target key end

     0   :  { %s233_s12 = smov [#allocation3]   ;;  %s289_s0 = inlined_call_operand.hbm [shape: s32[16], index: 0, kind: input, shape index: {}]   ;;  %s290_s1 = inlined_call_operand.hbm [shape: f32[64,128], index: 1, kind: input, shape index: {}]   ;;  %s291_s2 = inlined_call_operand.hbm [shape: f32[16,128], index: 2, kind: output, shape index: {}]  }
   0x1   :  { %s8_s11 = sshll.u32 %s289_s0, 4  ;;  %s9_s11 = int_to_ptr.hbm [resolvable:$true] %s8_s11 }
   0x2   :  { %11 = dma.hbm_to_smem %s9_s11, 16, %s233_s12, [#allocation2] }
   0x3   :  { %223 = dma.done.wait [#allocation2], 16 }
   0x4   :  { %224 = vsyncadd [#allocation2], 4294967280 }
   0x5   :  { %14 = sfence }
   0x6   :  { %15 = vsyncpa [#allocation5], 0 }
   0x7   :  { %16 = vsyncpa [#allocation6], 0  ;;  %s21_s15 = sshll.u32 %s290_s1, 4  ;;  %s234_s16 = smov [#allocation4]   ;;  %s22_s15 = int_to_ptr.hbm [resolvable:$true] %s21_s15 }
   0x8   :  { %s23_s17 = sshll.u32 %s234_s16, 4  ;;  %s235_s18 = smov 128   ;;  %s24_s17 = int_to_ptr.vmem [resolvable:$true] %s23_s17 }
   0x9   :  { %s236_s19 = smov 8  }
   0xa   :  { %29 = dma.hbm_to_vmem [thread:$0]  %s22_s15, 1024, %s24_s17, [#allocation5], %s235_s18, %s235_s18, %s236_s19  }
   0xb   :  { %225 = dma.done.wait [#allocation5], 1024  }
   0xc   :  { %226 = vsyncadd [#allocation5], 4294966272  ;;  %s262_s0 = smov 0  }
   0xd LB: > { %s268_s1 = sshll.u32 %s231_s0, 3  ;;  %vm95_vm0 = vcmask 1040384   ;;  %vm97_vm1 = vcmask 1041408   ;;  %vm99_vm2 = vcmask 1042432   ;;  %vm101_vm3 = vcmask 1043456   ;;  %s40_s0 = sadd.s32 1, %s231_s0   ;;  %s231_s0 = sphi %s262_s0, %s40_s0  }
   0xe   : > { %s43_s20 = sld [smem:[#allocation3 + %s268_s1]]  ;;  %s46_s21 = sadd.s32 1, %s268_s1  ;;  %vm103_vm4 = vcmask 1044480   ;;  %vm105_vm5 = vcmask 1045504   ;;  %vm107_vm6 = vcmask 1046528  }
   0xf   : > { %s47_s22 = sld [smem:[#allocation3 + %s46_s21]]  ;;  %s50_s23 = sadd.s32 2, %s268_s1 }
  0x10   : > { %s51_s24 = sld [smem:[#allocation3 + %s50_s23]]  ;;  %s54_s25 = sadd.s32 3, %s268_s1 }
  0x11   : > { %s55_s26 = sld [smem:[#allocation3 + %s54_s25]]  ;;  %s58_s27 = sadd.s32 4, %s268_s1 }
  0x12   : > { %s59_s28 = sld [smem:[#allocation3 + %s58_s27]]  ;;  %s62_s29 = sadd.s32 5, %s268_s1 }
  0x13   : > { %s63_s30 = sld [smem:[#allocation3 + %s62_s29]]  ;;  %s66_s3 = sadd.s32 6, %s268_s1 }
  0x14   : > { %s67_s4 = sld [smem:[#allocation3 + %s66_s3]]  ;;  %s70_s5 = sadd.s32 7, %s268_s1 }
  0x15   : > { %s44_s6 = scalar_lea.vmem [#allocation4], %s43_s20  ;;  %s48_s7 = scalar_lea.vmem [#allocation4], %s47_s22 }
  0x16   : > { %v45_v0 = vld [vmem:[%s44_s6] sm:$0x1]  ;;  %s71_s8 = sld [smem:[#allocation3 + %s70_s5]]  ;;  %s52_s9 = scalar_lea.vmem [#allocation4], %s51_s24 }
  0x17   : > { %v49_v1 = vld [vmem:[%s48_s7] sm:$0x1]  ;;  %s56_s10 = scalar_lea.vmem [#allocation4], %s55_s26  ;;  %s109_s15 = scalar_lea.vmem [#allocation7], %s268_s1 }
  0x18   : > { %v53_v2 = vld [vmem:[%s52_s9] sm:$0x1]  ;;  %v75_v3 = vrot.slane %v49_v1, 7  ;;  %s60_s11 = scalar_lea.vmem [#allocation4], %s59_s28  ;;  %p37_p0 = scmp.ge.s32.totalorder %s40_s0, 2  }
  0x19   : > { %v57_v4 = vld [vmem:[%s56_s10] sm:$0x1]  ;;  %v78_v5 = vrot.slane %v53_v2, 6  ;;  %s64_s12 = scalar_lea.vmem [#allocation4], %s63_s30  ;;  %s117_s20 = sshll.u32 (%p37_p0), %s291_s2, 4  ;;  %s118_s20 = int_to_ptr.hbm [resolvable:$true] %s117_s20 }
  0x1a   : > { %v61_v6 = vld [vmem:[%s60_s11] sm:$0x1]  ;;  %v81_v7 = vrot.slane %v57_v4, 5  ;;  %v96_v8 = vsel %vm95_vm0, %v45_v0, %v75_v3  ;;  %s68_s13 = scalar_lea.vmem [#allocation4], %s67_s4  ;;  %s237_s21 = smov (%p37_p0), [#allocation7]  }
  0x1b   : > { %v65_v9 = vld [vmem:[%s64_s12] sm:$0x1]  ;;  %v84_v10 = vrot.slane %v61_v6, 4  ;;  %v98_v11 = vsel %vm97_vm1, %v96_v8, %v78_v5  ;;  %s115_s22 = sshll.u32 (%p37_p0), %s237_s21, 4  ;;  %s116_s22 = int_to_ptr.vmem [resolvable:$true] %s115_s22 }
  0x1c   : > { %v69_v12 = vld [vmem:[%s68_s13] sm:$0x1]  ;;  %v87_v13 = vrot.slane %v65_v9, 3  ;;  %v100_v14 = vsel %vm99_vm2, %v98_v11, %v81_v7  ;;  %s72_s14 = scalar_lea.vmem [#allocation4], %s71_s8 }
  0x1d   : > { %v90_v15 = vrot.slane %v69_v12, 2  ;;  %v102_v16 = vsel %vm101_vm3, %v100_v14, %v84_v10  ;;  %v73_v17 = vld [vmem:[%s72_s14] sm:$0x1]  ;;  %39 = sbr.rel (!%p37_p0) target bundleno = 13 (0xd), region = 44 }
  0x1e   : > { %v104_v18 = vsel %vm103_vm4, %v102_v16, %v87_v13  ;;  %v93_v19 = vrot.slane %v73_v17, 1 }
  0x1f   : > { %v106_v20 = vsel %vm105_vm5, %v104_v18, %v90_v15 }
  0x20   : > { %v108_v21 = vsel %vm107_vm6, %v106_v20, %v93_v19 }
  0x21   : > { %110 = vst [vmem:[%s109_s15] sm:$0xff] %v108_v21 }
  0x22   :  { %123 = dma.vmem_to_hbm [thread:$0]  %s116_s22, 256, %s118_s20, [#allocation6], %s235_s18, %s235_s18, %s236_s19  }
  0x23   :  { %227 = dma.done.wait [#allocation6], 256  }
  0x24   :  { %228 = vsyncadd [#allocation6], 4294967040 }
  0x25   :  { %128 = vsyncpa [#allocation5], 1 }
  0x26   :  { %129 = vsyncpa [#allocation6], 1 }

</bundles_post_ra>
